<compile_context>
chip_gen: v5e
topology: v5e:2x2
jax: 0.10.0
libtpu: 0.0.40
codegen_flags: <defaults>
</compile_context>

<pallas_src>
import functools

import jax
import jax.numpy as jnp
from jax.experimental import pallas as pl
from jax.experimental.pallas import tpu as pltpu

# ---- module hyper-parameters (small, consistent with the module) ------------
BATCH = 2
NODE_NUM = 8
IN_FEATURE = 16
OUT_FEATURE = 16            # module halves this: final linear outputs OUT_FEATURE // 2
GRAPH_NUM = 2
DEPTH = 2
IN_HID = IN_FEATURE // GRAPH_NUM        # in_feature / graph_num
OUT_HALF = OUT_FEATURE // 2             # out_feature / 2
OUT_PAD = 128                           # lane-dense padded output width (vreg lane width)


# ---------------- fused Pallas kernel -----------------------------------------
def _ince_fused_kernel(x_ref, l_ref, wbyT_ref, bby_ref, masks_ref, wlT_ref, bl_ref,
                       o_ref, *, batch, depth, graph_num):
    """Fused InceLayer forward: all depth steps + final linear, one grid step.

    x_ref:     (B, N, F)
    l_ref:     (G*DEPTH, B, N, N)   l_ref[j*DEPTH + i, b] == L[j][i][b]
    wbyT_ref:  (DEPTH, F, F)        bypass weights, pre-transposed (x @ W^T)
    bby_ref:   (DEPTH, 1, F)        bypass biases
    masks_ref: (G, 1, F)            0/1 column masks selecting graph j's feature slice
    wlT_ref:   (F, OUT_PAD)         final linear weight^T, zero-padded to 128 lanes
    bl_ref:    (1, OUT_PAD)         final linear bias, zero-padded
    o_ref:     (B, N, OUT_PAD)      lane-dense output slab (real data in [..., :OUT_HALF])
    """
    for b in range(batch):                  # static unroll (tiny batch)
        xb = x_ref[b]                       # (N, F); stays in vregs across depth steps
        for i in range(depth):              # static unroll
            # bypass Linear: x @ W^T + b (weight already transposed -> plain MXU dot)
            y = jnp.dot(xb, wbyT_ref[i], preferred_element_type=jnp.float32)
            y = y + bby_ref[i]
            # graph propagation: concat_j(L_j @ x[:, j*hid:(j+1)*hid])
            #   == sum_j(L_j @ (x * mask_j))  -> lane-dense, no sub-lane slice/concat
            for j in range(graph_num):      # static unroll
                xm = xb * masks_ref[j]      # (N, F), zeros outside graph j's columns
                y = y + jnp.dot(l_ref[j * depth + i, b], xm,
                                preferred_element_type=jnp.float32)
            xb = y
        # final Linear into the lane-dense padded slab (full unmasked store)
        out_b = jnp.dot(xb, wlT_ref[...], preferred_element_type=jnp.float32)
        o_ref[b] = (out_b + bl_ref[...]).astype(o_ref.dtype)


# ---------------- InceLayer forward (Pallas) ----------------------------------
def ince_layer_forward(x, L, params):
    """x: (B, N, F) float32, L: (G, DEPTH, B, N, N) float32 (L[j][i] per PyTorch)."""
    B, N, F = x.shape
    G, depth = L.shape[0], L.shape[1]

    # Pre-transpose / stack all weights once at trace time (no in-kernel .T).
    wbyT = jnp.stack([w.T for (w, _) in params["bypass"]])               # (DEPTH, F, F)
    bby = jnp.stack([b.reshape(1, F) for (_, b) in params["bypass"]])    # (DEPTH, 1, F)
    wl, bl = params["linear"]
    O = wl.shape[0]
    wlT_pad = jnp.zeros((F, OUT_PAD), jnp.float32).at[:, :O].set(wl.T)   # (F, 128)
    bl_pad = jnp.zeros((1, OUT_PAD), jnp.float32).at[:, :O].set(bl)      # (1, 128)

    # 0/1 feature-column masks for each graph's slice.
    hid = F // G
    col = jnp.arange(F)
    masks = jnp.stack([
        ((col >= j * hid) & (col < (j + 1) * hid)).astype(jnp.float32).reshape(1, F)
        for j in range(G)])                                              # (G, 1, F)

    # Merge leading dims of L so the kernel indexes a 4-D block: [j*depth + i].
    l4d = L.reshape(G * depth, B, N, N)

    kernel = functools.partial(_ince_fused_kernel, batch=B, depth=depth, graph_num=G)
    y_pad = pl.pallas_call(
        kernel,
        out_shape=jax.ShapeDtypeStruct((B, N, OUT_PAD), jnp.float32),
        grid=(1,),                                    # single step: whole problem fits vregs
        in_specs=[
            pl.BlockSpec((B, N, F), lambda i: (0, 0, 0)),
            pl.BlockSpec((G * depth, B, N, N), lambda i: (0, 0, 0, 0)),
            pl.BlockSpec((depth, F, F), lambda i: (0, 0, 0)),
            pl.BlockSpec((depth, 1, F), lambda i: (0, 0, 0)),
            pl.BlockSpec((G, 1, F), lambda i: (0, 0, 0)),
            pl.BlockSpec((F, OUT_PAD), lambda i: (0, 0)),
            pl.BlockSpec((1, OUT_PAD), lambda i: (0, 0)),
        ],
        out_specs=pl.BlockSpec((B, N, OUT_PAD), lambda i: (0, 0, 0)),
        compiler_params=pltpu.CompilerParams(
            dimension_semantics=("arbitrary",)),       # keep single-core (v7x: no TC split)
    )(x, l4d, wbyT, bby, masks, wlT_pad, bl_pad)

    return y_pad[:, :, :O]                             # strip lane padding outside kernel


# ---------------- pure-JAX reference for verification --------------------------
def ince_layer_ref(x, L, params):
    for i in range(DEPTH):
        w, b = params["bypass"][i]
        parts = []
        for j in range(GRAPH_NUM):
            xj = x[:, :, j * IN_HID:(j + 1) * IN_HID]
            parts.append(jnp.einsum('bnm,bmh->bnh', L[j, i], xj))
        h = jnp.concatenate(parts, axis=2)
        x = jnp.einsum('bnf,gf->bng', x, w) + b + h
    wl, bl = params["linear"]
    return jnp.einsum('bnf,of->bno', x, wl) + bl


# ---------------- deterministic parameter / input construction -----------------
def make_params(key):
    keys = jax.random.split(key, 2 * DEPTH + 2)
    params = {"bypass": []}
    for i in range(DEPTH):
        w = jax.random.normal(keys[2 * i], (IN_FEATURE, IN_FEATURE), jnp.float32) * 0.1
        b = jax.random.normal(keys[2 * i + 1], (IN_FEATURE,), jnp.float32) * 0.1
        params["bypass"].append((w, b))
    wl = jax.random.normal(keys[-2], (OUT_HALF, IN_FEATURE), jnp.float32) * 0.1
    bl = jax.random.normal(keys[-1], (OUT_HALF,), jnp.float32) * 0.1
    params["linear"] = (wl, bl)
    return params


if __name__ == "__main__":
    key = jax.random.PRNGKey(0)
    kx, kl, kp = jax.random.split(key, 3)

    x = jax.random.normal(kx, (BATCH, NODE_NUM, IN_FEATURE), jnp.float32)
    # L[j][i] is a batch of (N, N) graph matrices
    L = jax.random.normal(
        kl, (GRAPH_NUM, DEPTH, BATCH, NODE_NUM, NODE_NUM), jnp.float32) * 0.25
    params = make_params(kp)

    out = jax.block_until_ready(ince_layer_forward(x, L, params))

    ref = ince_layer_ref(x, L, params)
    assert out.shape == (BATCH, NODE_NUM, OUT_HALF), out.shape
    assert jnp.allclose(out, ref, atol=1e-4, rtol=1e-4), \
        float(jnp.max(jnp.abs(out - ref)))
    print("KERNEL_OK")
</pallas_src>

<mosaic_0001>
module attributes {stable_mosaic.version = 11 : i64} {
  func.func @_ince_fused_kernel(%arg0: i32, %arg1: memref<2x8x16xf32, #tpu.memory_space<vmem>>, %arg2: memref<4x2x8x8xf32, #tpu.memory_space<vmem>>, %arg3: memref<2x16x16xf32, #tpu.memory_space<vmem>>, %arg4: memref<2x1x16xf32, #tpu.memory_space<vmem>>, %arg5: memref<2x1x16xf32, #tpu.memory_space<vmem>>, %arg6: memref<16x128xf32, #tpu.memory_space<vmem>>, %arg7: memref<1x128xf32, #tpu.memory_space<vmem>>, %arg8: memref<2x8x128xf32, #tpu.memory_space<vmem>>) attributes {dimension_semantics = [#tpu.dimension_semantics<arbitrary>], iteration_bounds = array<i64: 1>, scalar_prefetch = 0 : i64, scratch_operands = 0 : i64, tpu.core_type = #tpu.core_type<tc>, window_params = [{pipeline_mode = #tpu.pipeline_mode<synchronous>, transform_indices = @transform_0, window_bounds = array<i64: 2, 8, 16>}, {pipeline_mode = #tpu.pipeline_mode<synchronous>, transform_indices = @transform_1, window_bounds = array<i64: 4, 2, 8, 8>}, {pipeline_mode = #tpu.pipeline_mode<synchronous>, transform_indices = @transform_2, window_bounds = array<i64: 2, 16, 16>}, {pipeline_mode = #tpu.pipeline_mode<synchronous>, transform_indices = @transform_3, window_bounds = array<i64: 2, 1, 16>}, {pipeline_mode = #tpu.pipeline_mode<synchronous>, transform_indices = @transform_4, window_bounds = array<i64: 2, 1, 16>}, {pipeline_mode = #tpu.pipeline_mode<synchronous>, transform_indices = @transform_5, window_bounds = array<i64: 16, 128>}, {pipeline_mode = #tpu.pipeline_mode<synchronous>, transform_indices = @transform_6, window_bounds = array<i64: 1, 128>}, {pipeline_mode = #tpu.pipeline_mode<synchronous>, transform_indices = @transform_7, window_bounds = array<i64: 2, 8, 128>}]} {
    %c0 = arith.constant 0 : index
    %c0_0 = arith.constant 0 : index
    %c0_1 = arith.constant 0 : index
    %0 = vector.load %arg1[%c0, %c0_0, %c0_1] : memref<2x8x16xf32, #tpu.memory_space<vmem>>, vector<1x8x16xf32>
    %1 = vector.shape_cast %0 : vector<1x8x16xf32> to vector<8x16xf32>
    %c0_2 = arith.constant 0 : index
    %c0_3 = arith.constant 0 : index
    %c0_4 = arith.constant 0 : index
    %2 = vector.load %arg3[%c0_2, %c0_3, %c0_4] : memref<2x16x16xf32, #tpu.memory_space<vmem>>, vector<1x16x16xf32>
    %3 = vector.shape_cast %2 : vector<1x16x16xf32> to vector<16x16xf32>
    %cst = arith.constant dense<0.000000e+00> : vector<8x16xf32>
    %4 = tpu.matmul %1, %3, %cst {dimension_numbers = #tpu.dot_dimension_numbers<[1], [0], [0], [1], [0, 0, 1, 1], [], []>} : vector<8x16xf32>, vector<16x16xf32>, vector<8x16xf32> -> vector<8x16xf32>
    %c0_5 = arith.constant 0 : index
    %c0_6 = arith.constant 0 : index
    %c0_7 = arith.constant 0 : index
    %5 = vector.load %arg4[%c0_5, %c0_6, %c0_7] : memref<2x1x16xf32, #tpu.memory_space<vmem>>, vector<1x1x16xf32>
    %6 = vector.shape_cast %5 : vector<1x1x16xf32> to vector<1x16xf32>
    %7 = vector.broadcast %6 : vector<1x16xf32> to vector<8x16xf32>
    %8 = arith.addf %4, %7 : vector<8x16xf32>
    %c0_8 = arith.constant 0 : index
    %c0_9 = arith.constant 0 : index
    %c0_10 = arith.constant 0 : index
    %9 = vector.load %arg5[%c0_8, %c0_9, %c0_10] : memref<2x1x16xf32, #tpu.memory_space<vmem>>, vector<1x1x16xf32>
    %10 = vector.shape_cast %9 : vector<1x1x16xf32> to vector<1x16xf32>
    %11 = vector.broadcast %10 : vector<1x16xf32> to vector<8x16xf32>
    %12 = arith.mulf %1, %11 : vector<8x16xf32>
    %c0_11 = arith.constant 0 : index
    %c0_12 = arith.constant 0 : index
    %c0_13 = arith.constant 0 : index
    %c0_14 = arith.constant 0 : index
    %13 = vector.load %arg2[%c0_11, %c0_12, %c0_13, %c0_14] : memref<4x2x8x8xf32, #tpu.memory_space<vmem>>, vector<1x1x8x8xf32>
    %14 = vector.shape_cast %13 : vector<1x1x8x8xf32> to vector<8x8xf32>
    %cst_15 = arith.constant dense<0.000000e+00> : vector<8x16xf32>
    %15 = tpu.matmul %14, %12, %cst_15 {dimension_numbers = #tpu.dot_dimension_numbers<[1], [0], [0], [1], [0, 0, 1, 1], [], []>} : vector<8x8xf32>, vector<8x16xf32>, vector<8x16xf32> -> vector<8x16xf32>
    %16 = arith.addf %8, %15 : vector<8x16xf32>
    %c1 = arith.constant 1 : index
    %c0_16 = arith.constant 0 : index
    %c0_17 = arith.constant 0 : index
    %17 = vector.load %arg5[%c1, %c0_16, %c0_17] : memref<2x1x16xf32, #tpu.memory_space<vmem>>, vector<1x1x16xf32>
    %18 = vector.shape_cast %17 : vector<1x1x16xf32> to vector<1x16xf32>
    %19 = vector.broadcast %18 : vector<1x16xf32> to vector<8x16xf32>
    %20 = arith.mulf %1, %19 : vector<8x16xf32>
    %c2 = arith.constant 2 : index
    %c0_18 = arith.constant 0 : index
    %c0_19 = arith.constant 0 : index
    %c0_20 = arith.constant 0 : index
    %21 = vector.load %arg2[%c2, %c0_18, %c0_19, %c0_20] : memref<4x2x8x8xf32, #tpu.memory_space<vmem>>, vector<1x1x8x8xf32>
    %22 = vector.shape_cast %21 : vector<1x1x8x8xf32> to vector<8x8xf32>
    %cst_21 = arith.constant dense<0.000000e+00> : vector<8x16xf32>
    %23 = tpu.matmul %22, %20, %cst_21 {dimension_numbers = #tpu.dot_dimension_numbers<[1], [0], [0], [1], [0, 0, 1, 1], [], []>} : vector<8x8xf32>, vector<8x16xf32>, vector<8x16xf32> -> vector<8x16xf32>
    %24 = arith.addf %16, %23 : vector<8x16xf32>
    %c1_22 = arith.constant 1 : index
    %c0_23 = arith.constant 0 : index
    %c0_24 = arith.constant 0 : index
    %25 = vector.load %arg3[%c1_22, %c0_23, %c0_24] : memref<2x16x16xf32, #tpu.memory_space<vmem>>, vector<1x16x16xf32>
    %26 = vector.shape_cast %25 : vector<1x16x16xf32> to vector<16x16xf32>
    %cst_25 = arith.constant dense<0.000000e+00> : vector<8x16xf32>
    %27 = tpu.matmul %24, %26, %cst_25 {dimension_numbers = #tpu.dot_dimension_numbers<[1], [0], [0], [1], [0, 0, 1, 1], [], []>} : vector<8x16xf32>, vector<16x16xf32>, vector<8x16xf32> -> vector<8x16xf32>
    %c1_26 = arith.constant 1 : index
    %c0_27 = arith.constant 0 : index
    %c0_28 = arith.constant 0 : index
    %28 = vector.load %arg4[%c1_26, %c0_27, %c0_28] : memref<2x1x16xf32, #tpu.memory_space<vmem>>, vector<1x1x16xf32>
    %29 = vector.shape_cast %28 : vector<1x1x16xf32> to vector<1x16xf32>
    %30 = vector.broadcast %29 : vector<1x16xf32> to vector<8x16xf32>
    %31 = arith.addf %27, %30 : vector<8x16xf32>
    %c0_29 = arith.constant 0 : index
    %c0_30 = arith.constant 0 : index
    %c0_31 = arith.constant 0 : index
    %32 = vector.load %arg5[%c0_29, %c0_30, %c0_31] : memref<2x1x16xf32, #tpu.memory_space<vmem>>, vector<1x1x16xf32>
    %33 = vector.shape_cast %32 : vector<1x1x16xf32> to vector<1x16xf32>
    %34 = vector.broadcast %33 : vector<1x16xf32> to vector<8x16xf32>
    %35 = arith.mulf %24, %34 : vector<8x16xf32>
    %c1_32 = arith.constant 1 : index
    %c0_33 = arith.constant 0 : index
    %c0_34 = arith.constant 0 : index
    %c0_35 = arith.constant 0 : index
    %36 = vector.load %arg2[%c1_32, %c0_33, %c0_34, %c0_35] : memref<4x2x8x8xf32, #tpu.memory_space<vmem>>, vector<1x1x8x8xf32>
    %37 = vector.shape_cast %36 : vector<1x1x8x8xf32> to vector<8x8xf32>
    %cst_36 = arith.constant dense<0.000000e+00> : vector<8x16xf32>
    %38 = tpu.matmul %37, %35, %cst_36 {dimension_numbers = #tpu.dot_dimension_numbers<[1], [0], [0], [1], [0, 0, 1, 1], [], []>} : vector<8x8xf32>, vector<8x16xf32>, vector<8x16xf32> -> vector<8x16xf32>
    %39 = arith.addf %31, %38 : vector<8x16xf32>
    %c1_37 = arith.constant 1 : index
    %c0_38 = arith.constant 0 : index
    %c0_39 = arith.constant 0 : index
    %40 = vector.load %arg5[%c1_37, %c0_38, %c0_39] : memref<2x1x16xf32, #tpu.memory_space<vmem>>, vector<1x1x16xf32>
    %41 = vector.shape_cast %40 : vector<1x1x16xf32> to vector<1x16xf32>
    %42 = vector.broadcast %41 : vector<1x16xf32> to vector<8x16xf32>
    %43 = arith.mulf %24, %42 : vector<8x16xf32>
    %c3 = arith.constant 3 : index
    %c0_40 = arith.constant 0 : index
    %c0_41 = arith.constant 0 : index
    %c0_42 = arith.constant 0 : index
    %44 = vector.load %arg2[%c3, %c0_40, %c0_41, %c0_42] : memref<4x2x8x8xf32, #tpu.memory_space<vmem>>, vector<1x1x8x8xf32>
    %45 = vector.shape_cast %44 : vector<1x1x8x8xf32> to vector<8x8xf32>
    %cst_43 = arith.constant dense<0.000000e+00> : vector<8x16xf32>
    %46 = tpu.matmul %45, %43, %cst_43 {dimension_numbers = #tpu.dot_dimension_numbers<[1], [0], [0], [1], [0, 0, 1, 1], [], []>} : vector<8x8xf32>, vector<8x16xf32>, vector<8x16xf32> -> vector<8x16xf32>
    %47 = arith.addf %39, %46 : vector<8x16xf32>
    %c0_44 = arith.constant 0 : index
    %c0_45 = arith.constant 0 : index
    %48 = vector.load %arg6[%c0_44, %c0_45] : memref<16x128xf32, #tpu.memory_space<vmem>>, vector<16x128xf32>
    %cst_46 = arith.constant dense<0.000000e+00> : vector<8x128xf32>
    %49 = tpu.matmul %47, %48, %cst_46 {dimension_numbers = #tpu.dot_dimension_numbers<[1], [0], [0], [1], [0, 0, 1, 1], [], []>} : vector<8x16xf32>, vector<16x128xf32>, vector<8x128xf32> -> vector<8x128xf32>
    %c0_47 = arith.constant 0 : index
    %c0_48 = arith.constant 0 : index
    %50 = vector.load %arg7[%c0_47, %c0_48] : memref<1x128xf32, #tpu.memory_space<vmem>>, vector<1x128xf32>
    %51 = vector.broadcast %50 : vector<1x128xf32> to vector<8x128xf32>
    %52 = arith.addf %49, %51 : vector<8x128xf32>
    %c0_49 = arith.constant 0 : index
    %c0_50 = arith.constant 0 : index
    %c0_51 = arith.constant 0 : index
    %53 = vector.load %arg8[%c0_49, %c0_50, %c0_51] : memref<2x8x128xf32, #tpu.memory_space<vmem>>, vector<1x8x128xf32>
    %54 = vector.shape_cast %53 : vector<1x8x128xf32> to vector<8x128xf32>
    %55 = vector.shape_cast %52 : vector<8x128xf32> to vector<1x8x128xf32>
    tpu.vector_store %arg8[%c0_49, %c0_50, %c0_51], %55 {strides = array<i32>} : memref<2x8x128xf32, #tpu.memory_space<vmem>>, vector<1x8x128xf32>,
    %c1_52 = arith.constant 1 : index
    %c0_53 = arith.constant 0 : index
    %c0_54 = arith.constant 0 : index
    %56 = vector.load %arg1[%c1_52, %c0_53, %c0_54] : memref<2x8x16xf32, #tpu.memory_space<vmem>>, vector<1x8x16xf32>
    %57 = vector.shape_cast %56 : vector<1x8x16xf32> to vector<8x16xf32>
    %c0_55 = arith.constant 0 : index
    %c0_56 = arith.constant 0 : index
    %c0_57 = arith.constant 0 : index
    %58 = vector.load %arg3[%c0_55, %c0_56, %c0_57] : memref<2x16x16xf32, #tpu.memory_space<vmem>>, vector<1x16x16xf32>
    %59 = vector.shape_cast %58 : vector<1x16x16xf32> to vector<16x16xf32>
    %cst_58 = arith.constant dense<0.000000e+00> : vector<8x16xf32>
    %60 = tpu.matmul %57, %59, %cst_58 {dimension_numbers = #tpu.dot_dimension_numbers<[1], [0], [0], [1], [0, 0, 1, 1], [], []>} : vector<8x16xf32>, vector<16x16xf32>, vector<8x16xf32> -> vector<8x16xf32>
    %c0_59 = arith.constant 0 : index
    %c0_60 = arith.constant 0 : index
    %c0_61 = arith.constant 0 : index
    %61 = vector.load %arg4[%c0_59, %c0_60, %c0_61] : memref<2x1x16xf32, #tpu.memory_space<vmem>>, vector<1x1x16xf32>
    %62 = vector.shape_cast %61 : vector<1x1x16xf32> to vector<1x16xf32>
    %63 = vector.broadcast %62 : vector<1x16xf32> to vector<8x16xf32>
    %64 = arith.addf %60, %63 : vector<8x16xf32>
    %c0_62 = arith.constant 0 : index
    %c0_63 = arith.constant 0 : index
    %c0_64 = arith.constant 0 : index
    %65 = vector.load %arg5[%c0_62, %c0_63, %c0_64] : memref<2x1x16xf32, #tpu.memory_space<vmem>>, vector<1x1x16xf32>
    %66 = vector.shape_cast %65 : vector<1x1x16xf32> to vector<1x16xf32>
    %67 = vector.broadcast %66 : vector<1x16xf32> to vector<8x16xf32>
    %68 = arith.mulf %57, %67 : vector<8x16xf32>
    %c0_65 = arith.constant 0 : index
    %c1_66 = arith.constant 1 : index
    %c0_67 = arith.constant 0 : index
    %c0_68 = arith.constant 0 : index
    %69 = vector.load %arg2[%c0_65, %c1_66, %c0_67, %c0_68] : memref<4x2x8x8xf32, #tpu.memory_space<vmem>>, vector<1x1x8x8xf32>
    %70 = vector.shape_cast %69 : vector<1x1x8x8xf32> to vector<8x8xf32>
    %cst_69 = arith.constant dense<0.000000e+00> : vector<8x16xf32>
    %71 = tpu.matmul %70, %68, %cst_69 {dimension_numbers = #tpu.dot_dimension_numbers<[1], [0], [0], [1], [0, 0, 1, 1], [], []>} : vector<8x8xf32>, vector<8x16xf32>, vector<8x16xf32> -> vector<8x16xf32>
    %72 = arith.addf %64, %71 : vector<8x16xf32>
    %c1_70 = arith.constant 1 : index
    %c0_71 = arith.constant 0 : index
    %c0_72 = arith.constant 0 : index
    %73 = vector.load %arg5[%c1_70, %c0_71, %c0_72] : memref<2x1x16xf32, #tpu.memory_space<vmem>>, vector<1x1x16xf32>
    %74 = vector.shape_cast %73 : vector<1x1x16xf32> to vector<1x16xf32>
    %75 = vector.broadcast %74 : vector<1x16xf32> to vector<8x16xf32>
    %76 = arith.mulf %57, %75 : vector<8x16xf32>
    %c2_73 = arith.constant 2 : index
    %c1_74 = arith.constant 1 : index
    %c0_75 = arith.constant 0 : index
    %c0_76 = arith.constant 0 : index
    %77 = vector.load %arg2[%c2_73, %c1_74, %c0_75, %c0_76] : memref<4x2x8x8xf32, #tpu.memory_space<vmem>>, vector<1x1x8x8xf32>
    %78 = vector.shape_cast %77 : vector<1x1x8x8xf32> to vector<8x8xf32>
    %cst_77 = arith.constant dense<0.000000e+00> : vector<8x16xf32>
    %79 = tpu.matmul %78, %76, %cst_77 {dimension_numbers = #tpu.dot_dimension_numbers<[1], [0], [0], [1], [0, 0, 1, 1], [], []>} : vector<8x8xf32>, vector<8x16xf32>, vector<8x16xf32> -> vector<8x16xf32>
    %80 = arith.addf %72, %79 : vector<8x16xf32>
    %c1_78 = arith.constant 1 : index
    %c0_79 = arith.constant 0 : index
    %c0_80 = arith.constant 0 : index
    %81 = vector.load %arg3[%c1_78, %c0_79, %c0_80] : memref<2x16x16xf32, #tpu.memory_space<vmem>>, vector<1x16x16xf32>
    %82 = vector.shape_cast %81 : vector<1x16x16xf32> to vector<16x16xf32>
    %cst_81 = arith.constant dense<0.000000e+00> : vector<8x16xf32>
    %83 = tpu.matmul %80, %82, %cst_81 {dimension_numbers = #tpu.dot_dimension_numbers<[1], [0], [0], [1], [0, 0, 1, 1], [], []>} : vector<8x16xf32>, vector<16x16xf32>, vector<8x16xf32> -> vector<8x16xf32>
    %c1_82 = arith.constant 1 : index
    %c0_83 = arith.constant 0 : index
    %c0_84 = arith.constant 0 : index
    %84 = vector.load %arg4[%c1_82, %c0_83, %c0_84] : memref<2x1x16xf32, #tpu.memory_space<vmem>>, vector<1x1x16xf32>
    %85 = vector.shape_cast %84 : vector<1x1x16xf32> to vector<1x16xf32>
    %86 = vector.broadcast %85 : vector<1x16xf32> to vector<8x16xf32>
    %87 = arith.addf %83, %86 : vector<8x16xf32>
    %c0_85 = arith.constant 0 : index
    %c0_86 = arith.constant 0 : index
    %c0_87 = arith.constant 0 : index
    %88 = vector.load %arg5[%c0_85, %c0_86, %c0_87] : memref<2x1x16xf32, #tpu.memory_space<vmem>>, vector<1x1x16xf32>
    %89 = vector.shape_cast %88 : vector<1x1x16xf32> to vector<1x16xf32>
    %90 = vector.broadcast %89 : vector<1x16xf32> to vector<8x16xf32>
    %91 = arith.mulf %80, %90 : vector<8x16xf32>
    %c1_88 = arith.constant 1 : index
    %c1_89 = arith.constant 1 : index
    %c0_90 = arith.constant 0 : index
    %c0_91 = arith.constant 0 : index
    %92 = vector.load %arg2[%c1_88, %c1_89, %c0_90, %c0_91] : memref<4x2x8x8xf32, #tpu.memory_space<vmem>>, vector<1x1x8x8xf32>
    %93 = vector.shape_cast %92 : vector<1x1x8x8xf32> to vector<8x8xf32>
    %cst_92 = arith.constant dense<0.000000e+00> : vector<8x16xf32>
    %94 = tpu.matmul %93, %91, %cst_92 {dimension_numbers = #tpu.dot_dimension_numbers<[1], [0], [0], [1], [0, 0, 1, 1], [], []>} : vector<8x8xf32>, vector<8x16xf32>, vector<8x16xf32> -> vector<8x16xf32>
    %95 = arith.addf %87, %94 : vector<8x16xf32>
    %c1_93 = arith.constant 1 : index
    %c0_94 = arith.constant 0 : index
    %c0_95 = arith.constant 0 : index
    %96 = vector.load %arg5[%c1_93, %c0_94, %c0_95] : memref<2x1x16xf32, #tpu.memory_space<vmem>>, vector<1x1x16xf32>
    %97 = vector.shape_cast %96 : vector<1x1x16xf32> to vector<1x16xf32>
    %98 = vector.broadcast %97 : vector<1x16xf32> to vector<8x16xf32>
    %99 = arith.mulf %80, %98 : vector<8x16xf32>
    %c3_96 = arith.constant 3 : index
    %c1_97 = arith.constant 1 : index
    %c0_98 = arith.constant 0 : index
    %c0_99 = arith.constant 0 : index
    %100 = vector.load %arg2[%c3_96, %c1_97, %c0_98, %c0_99] : memref<4x2x8x8xf32, #tpu.memory_space<vmem>>, vector<1x1x8x8xf32>
    %101 = vector.shape_cast %100 : vector<1x1x8x8xf32> to vector<8x8xf32>
    %cst_100 = arith.constant dense<0.000000e+00> : vector<8x16xf32>
    %102 = tpu.matmul %101, %99, %cst_100 {dimension_numbers = #tpu.dot_dimension_numbers<[1], [0], [0], [1], [0, 0, 1, 1], [], []>} : vector<8x8xf32>, vector<8x16xf32>, vector<8x16xf32> -> vector<8x16xf32>
    %103 = arith.addf %95, %102 : vector<8x16xf32>
    %c0_101 = arith.constant 0 : index
    %c0_102 = arith.constant 0 : index
    %104 = vector.load %arg6[%c0_101, %c0_102] : memref<16x128xf32, #tpu.memory_space<vmem>>, vector<16x128xf32>
    %cst_103 = arith.constant dense<0.000000e+00> : vector<8x128xf32>
    %105 = tpu.matmul %103, %104, %cst_103 {dimension_numbers = #tpu.dot_dimension_numbers<[1], [0], [0], [1], [0, 0, 1, 1], [], []>} : vector<8x16xf32>, vector<16x128xf32>, vector<8x128xf32> -> vector<8x128xf32>
    %c0_104 = arith.constant 0 : index
    %c0_105 = arith.constant 0 : index
    %106 = vector.load %arg7[%c0_104, %c0_105] : memref<1x128xf32, #tpu.memory_space<vmem>>, vector<1x128xf32>
    %107 = vector.broadcast %106 : vector<1x128xf32> to vector<8x128xf32>
    %108 = arith.addf %105, %107 : vector<8x128xf32>
    %c1_106 = arith.constant 1 : index
    %c0_107 = arith.constant 0 : index
    %c0_108 = arith.constant 0 : index
    %109 = vector.load %arg8[%c1_106, %c0_107, %c0_108] : memref<2x8x128xf32, #tpu.memory_space<vmem>>, vector<1x8x128xf32>
    %110 = vector.shape_cast %109 : vector<1x8x128xf32> to vector<8x128xf32>
    %111 = vector.shape_cast %108 : vector<8x128xf32> to vector<1x8x128xf32>
    tpu.vector_store %arg8[%c1_106, %c0_107, %c0_108], %111 {strides = array<i32>} : memref<2x8x128xf32, #tpu.memory_space<vmem>>, vector<1x8x128xf32>,
    return
  }
  func.func @transform_0(%arg0: i32) -> (i32, i32, i32) {
    %c0_i32 = arith.constant 0 : i32
    %c0_i32_0 = arith.constant 0 : i32
    %c0_i32_1 = arith.constant 0 : i32
    %c0_i32_2 = arith.constant 0 : i32
    return %c0_i32, %c0_i32_0, %c0_i32_1 : i32, i32, i32
  }
  func.func @transform_1(%arg0: i32) -> (i32, i32, i32, i32) {
    %c0_i32 = arith.constant 0 : i32
    %c0_i32_0 = arith.constant 0 : i32
    %c0_i32_1 = arith.constant 0 : i32
    %c0_i32_2 = arith.constant 0 : i32
    %c0_i32_3 = arith.constant 0 : i32
    return %c0_i32, %c0_i32_0, %c0_i32_1, %c0_i32_2 : i32, i32, i32, i32
  }
  func.func @transform_2(%arg0: i32) -> (i32, i32, i32) {
    %c0_i32 = arith.constant 0 : i32
    %c0_i32_0 = arith.constant 0 : i32
    %c0_i32_1 = arith.constant 0 : i32
    %c0_i32_2 = arith.constant 0 : i32
    return %c0_i32, %c0_i32_0, %c0_i32_1 : i32, i32, i32
  }
  func.func @transform_3(%arg0: i32) -> (i32, i32, i32) {
    %c0_i32 = arith.constant 0 : i32
    %c0_i32_0 = arith.constant 0 : i32
    %c0_i32_1 = arith.constant 0 : i32
    %c0_i32_2 = arith.constant 0 : i32
    return %c0_i32, %c0_i32_0, %c0_i32_1 : i32, i32, i32
  }
  func.func @transform_4(%arg0: i32) -> (i32, i32, i32) {
    %c0_i32 = arith.constant 0 : i32
    %c0_i32_0 = arith.constant 0 : i32
    %c0_i32_1 = arith.constant 0 : i32
    %c0_i32_2 = arith.constant 0 : i32
    return %c0_i32, %c0_i32_0, %c0_i32_1 : i32, i32, i32
  }
  func.func @transform_5(%arg0: i32) -> (i32, i32) {
    %c0_i32 = arith.constant 0 : i32
    %c0_i32_0 = arith.constant 0 : i32
    %c0_i32_1 = arith.constant 0 : i32
    return %c0_i32, %c0_i32_0 : i32, i32
  }
  func.func @transform_6(%arg0: i32) -> (i32, i32) {
    %c0_i32 = arith.constant 0 : i32
    %c0_i32_0 = arith.constant 0 : i32
    %c0_i32_1 = arith.constant 0 : i32
    return %c0_i32, %c0_i32_0 : i32, i32
  }
  func.func @transform_7(%arg0: i32) -> (i32, i32, i32) {
    %c0_i32 = arith.constant 0 : i32
    %c0_i32_0 = arith.constant 0 : i32
    %c0_i32_1 = arith.constant 0 : i32
    %c0_i32_2 = arith.constant 0 : i32
    return %c0_i32, %c0_i32_0, %c0_i32_1 : i32, i32, i32
  }
}

</mosaic_0001>

<bundles_post_ra>
// kernel: tpu_custom_call.1
= control target key start
LH: loop header
LB: loop body
LE: loop exit
PB: predicated region body
PF: predicated region fallthrough
CT: control target
= control target key end

     0   :  { %12 = vsyncpa [#allocation3], 0  ;;  %s845_s0 = inlined_call_operand.hbm [shape: f32[2,8,16], index: 0, kind: input, shape index: {}]   ;;  %s846_s1 = inlined_call_operand.hbm [shape: f32[4,2,8,8], index: 1, kind: input, shape index: {}]   ;;  %s847_s2 = inlined_call_operand.hbm [shape: f32[2,16,16], index: 2, kind: input, shape index: {}]   ;;  %s848_s3 = inlined_call_operand.vmem [shape: f32[2,1,16], index: 3, kind: input, shape index: {}]   ;;  %s849_s4 = inlined_call_operand.hbm [shape: f32[2,1,16], index: 4, kind: input, shape index: {}]   ;;  %s850_s5 = inlined_call_operand.hbm [shape: f32[16,128], index: 5, kind: input, shape index: {}]   ;;  %s851_s6 = inlined_call_operand.vmem [shape: f32[1,128], index: 6, kind: input, shape index: {}]   ;;  %s852_s7 = inlined_call_operand.hbm [shape: f32[2,8,128], index: 7, kind: output, shape index: {}]  }
   0x1   :  { %13 = vsyncpa [#allocation6], 0 }
   0x2   :  { %14 = vsyncpa [#allocation9], 0 }
   0x3   :  { %15 = vsyncpa [#allocation4], 0  ;;  %s33_s26 = sshll.u32 %s846_s1, 4  ;;  %s730_s27 = smov [#allocation5]   ;;  %s34_s26 = int_to_ptr.hbm [resolvable:$true] %s33_s26 }
   0x4   :  { %s35_s28 = sshll.u32 %s730_s27, 4  ;;  %s61_s8 = sshll.u32 %s849_s4, 4  ;;  %s36_s28 = int_to_ptr.vmem [resolvable:$true] %s35_s28  ;;  %s62_s8 = int_to_ptr.hbm [resolvable:$true] %s61_s8 }
   0x5   :  { %s731_s9 = smov 128   ;;  %s732_s10 = smov 8  }
   0x6   :  { %41 = dma.hbm_to_vmem [thread:$0]  %s34_s26, 1024, %s36_s28, [#allocation6], %s731_s9, %s731_s9, %s732_s10  }
   0x7   :  { %s733_s11 = smov [#allocation8]   ;;  %s734_s13 = smov 16  }
   0x8   :  { %s63_s12 = sshll.u32 %s733_s11, 4  ;;  %s735_s1 = smov 1   ;;  %s64_s12 = int_to_ptr.vmem [resolvable:$true] %s63_s12 }
   0x9   :  { %69 = dma.hbm_to_vmem [thread:$0]  %s62_s8, 32, %s64_s12, [#allocation9], %s734_s13, %s734_s13, %s735_s1  }
   0xa   :  { %s20_s16 = sshll.u32 %s845_s0, 4  ;;  %s736_s17 = smov [#allocation2]   ;;  %s21_s16 = int_to_ptr.hbm [resolvable:$true] %s20_s16 }
   0xb   :  { %s22_s4 = sshll.u32 %s736_s17, 4  ;;  %s46_s20 = sshll.u32 %s847_s2, 4  ;;  %s23_s4 = int_to_ptr.vmem [resolvable:$true] %s22_s4  ;;  %s47_s20 = int_to_ptr.hbm [resolvable:$true] %s46_s20 }
   0xc   :  { %28 = dma.hbm_to_vmem [thread:$0]  %s21_s16, 256, %s23_s4, [#allocation3], %s731_s9, %s731_s9, %s732_s10  }
   0xd   :  { %s737_s21 = smov [#allocation7]   ;;  %s74_s25 = sshll.u32 %s850_s5, 4  ;;  %s75_s25 = int_to_ptr.hbm [resolvable:$true] %s74_s25 }
   0xe   :  { %s48_s22 = sshll.u32 %s737_s21, 4  ;;  %s738_s0 = smov [#allocation10]   ;;  %s49_s22 = int_to_ptr.vmem [resolvable:$true] %s48_s22 }
   0xf   :  { %54 = dma.hbm_to_vmem [thread:$0]  %s47_s20, 512, %s49_s22, [#allocation6], %s731_s9, %s731_s9, %s732_s10  }
  0x10   :  { %s76_s26 = sshll.u32 %s738_s0, 4  ;;  %s77_s26 = int_to_ptr.vmem [resolvable:$true] %s76_s26 }
  0x11   :  { %82 = dma.hbm_to_vmem [thread:$0]  %s75_s25, 256, %s77_s26, [#allocation9], %s731_s9, %s731_s9, %s732_s10  }
  0x12   :  { %722 = dma.done.wait [#allocation3], 256  }
  0x13   :  { %723 = vsyncadd [#allocation3], 4294967040 }
  0x14   :  { %724 = dma.done.wait [#allocation6], 1536  }
  0x15   :  { %725 = vsyncadd [#allocation6], 4294965760 }
  0x16   :  { %726 = dma.done.wait [#allocation9], 288  }
  0x17   :  { %727 = vsyncadd [#allocation9], 4294967008  ;;  %v107_v0 = vld [vmem:[#allocation7 + $0x8] sm:$0xff]  ;;  %v105_v1 = vld [vmem:[#allocation2] sm:$0xff]  ;;  %vm112_vm0 = vcmask 130048   ;;  %vm142_vm1 = vcmask 64512  }
  0x18   :  { %130 = vmatpush.msra.mxu0 %v107_v0  ;;  %v568_v2 = vld [vmem:[#allocation8 + $0x1] ss:$0 sm:$0xff]  ;;  %v569_v5 = vld [vmem:[#allocation8] ss:$0 sm:$0xff]  ;;  %v201_v9 = vld [vmem:[#allocation7 + $0x18] sm:$0xff]  ;;  %s739_s15 = smov [#allocation11]  }
  0x19   :  { %v106_v3 = vld [vmem:[#allocation7] sm:$0xff]  ;;  %v172_v6 = vmul.f32 %v568_v2, %v105_v1  ;;  %v140_v8 = vmul.f32 %v569_v5, %v105_v1  ;;  %224 = vmatpush.msra.mxu3 %v201_v9  ;;  %v200_v10 = vld [vmem:[#allocation7 + $0x10] sm:$0xff]  ;;  %v315_v19 = vld [vmem:[#allocation2 + $0x8] sm:$0xff]  ;;  %s525_s16 = sshll.u32 %s739_s15, 4  ;;  %s527_s18 = sshll.u32 %s852_s7, 4  ;;  %s526_s16 = int_to_ptr.vmem [resolvable:$true] %s525_s16  ;;  %s528_s18 = int_to_ptr.hbm [resolvable:$true] %s527_s18 }
  0x1a   :  { %v174_v4 = vld [vmem:[#allocation5 + $0x20] sm:$0xff]  ;;  %131 = vmatpush.msra.mxu0 %v106_v3  ;;  %v570_v11 = vld [vmem:[%s848_s3] ss:$0 sm:$0xff]  ;;  %v382_v27 = vld [vmem:[#allocation5 + $0x28] sm:$0xff] }
  0x1b   :  { %v141_v7 = vld [vmem:[#allocation5] sm:$0xff]  ;;  %542 = vmatmul.msk.f32.vlgmr.msra.gmra.mxu0 %vm112_vm0, %v105_v1  ;;  %193 = vmatpush.msra.mxu2 %v172_v6  ;;  %v259_v23 = vld [vmem:[#allocation5 + $0x30] sm:$0xff]  ;;  %v351_v28 = vld [vmem:[#allocation5 + $0x8] sm:$0xff] }
  0x1c   :  { %544 = vmatmul.msk.f32.vlgmr.msra.gmra.mxu2 %vm142_vm1, %v174_v4  ;;  %161 = vmatpush.msra.mxu1 %v140_v8  ;;  %v571_v16 = vld [vmem:[#allocation8] ss:$0 sm:$0xff]  ;;  %v572_v17 = vld [vmem:[#allocation8 + $0x1] ss:$0 sm:$0xff]  ;;  %v232_v24 = vld [vmem:[#allocation5 + $0x10] sm:$0xff] }
  0x1d   :  { %543 = vmatmul.msk.f32.vlgmr.msra.gmra.mxu1 %vm142_vm1, %v141_v7  ;;  %225 = vmatpush.msra.mxu3 %v200_v10  ;;  %v349_v25 = vmul.f32 %v571_v16, %v315_v19  ;;  %v380_v26 = vmul.f32 %v572_v17, %v315_v19  ;;  %v285_v29 = vld [vmem:[#allocation10 + $0x8] sm:$0xff]  ;;  %v284_v30 = vld [vmem:[#allocation10] sm:$0xff]  ;;  %v438_v47 = vld [vmem:[#allocation5 + $0x18] sm:$0xff] }
  0x1e   :  { %307 = vmatpush.msrb.mxu0 %v285_v29  ;;  %v573_v31 = vld [vmem:[%s848_s3 + $0x1] ss:$0 sm:$0xff]  ;;  %v574_v38 = vld [vmem:[%s848_s3] ss:$0 sm:$0xff]  ;;  %v465_v48 = vld [vmem:[#allocation5 + $0x38] sm:$0xff] }
  0x1f   :  { %339 = vmatpush.msrb.mxu3 %v107_v0  ;;  %v575_v49 = vld [vmem:[%s851_s6] ss:$0 sm:$0xff]  ;;  %v576_v52 = vld [vmem:[%s848_s3 + $0x1] ss:$0 sm:$0xff] }
  0x20   :  { %308 = vmatpush.msrb.mxu0 %v284_v30  ;;  %v577_v59 = vld [vmem:[%s851_s6] ss:$0 sm:$0xff] }
  0x21   :  { %340 = vmatpush.msrb.mxu3 %v106_v3 }
  0x22   :  { %430 = vmatpush.msra.mxu0 %v201_v9 }
  0x24   :  { %431 = vmatpush.msra.mxu0 %v200_v10 }
  0x98   :  { %v133_v12 = vpop.f32.mrf.mxu0 }
  0x99   :  { %v134_v13 = vadd.f32 %v570_v11, %v133_v12 }
  0x9a   :  { %v163_v14 = vpop.f32.mrf.mxu1 }
  0x9b   :  { %v166_v15 = vadd.f32 %v163_v14, %v134_v13 }
  0x9f   :  { %v195_v18 = vpop.f32.mrf.mxu2 }
  0xa0   :  { %v198_v20 = vadd.f32 %v195_v18, %v166_v15 }
  0xa2   :  { %546 = vmatmul.msk.f32.vlgmr.msra.gmra.mxu3 %vm112_vm0, %v198_v20  ;;  %v230_v21 = vmul.f32 %v569_v5, %v198_v20  ;;  %v257_v22 = vmul.f32 %v568_v2, %v198_v20 }
  0xa4   :  { %251 = vmatpush.msrb.mxu1 %v230_v21  ;;  %278 = vmatpush.msrb.mxu2 %v257_v22 }
  0xa5   :  { %548 = vmatmul.msk.f32.vlgmr.msrb.gmra.mxu2 %vm142_vm1, %v259_v23  ;;  %547 = vmatmul.msk.f32.vlgmr.msrb.gmra.mxu1 %vm142_vm1, %v232_v24 }
  0xa6   :  { %401 = vmatpush.msra.mxu2 %v380_v26  ;;  %370 = vmatpush.msra.mxu1 %v349_v25 }
  0xa8   :  { %513 = vmatpush.msrb.mxu2 %v285_v29 }
  0xaa   :  { %550 = vmatmul.msk.f32.vlgmr.msrb.gmra.mxu3 %vm112_vm0, %v315_v19  ;;  %514 = vmatpush.msrb.mxu2 %v284_v30 }
  0xad   :  { %552 = vmatmul.msk.f32.vlgmr.msra.gmra.mxu2 %vm142_vm1, %v382_v27  ;;  %551 = vmatmul.msk.f32.vlgmr.msra.gmra.mxu1 %vm142_vm1, %v351_v28 }
 0x122   :  { %v253_v32 = vpop.f32.mrf.mxu1 }
 0x125   :  { %v227_v33 = vpop.f32.mrf.mxu3 }
 0x126   :  { %v228_v34 = vadd.f32 %v573_v31, %v227_v33 }
 0x128   :  { %v256_v35 = vadd.f32 %v253_v32, %v228_v34  ;;  %v280_v36 = vpop.f32.mrf.mxu2 }
 0x12a   :  { %v283_v37 = vadd.f32 %v280_v36, %v256_v35  ;;  %v372_v40 = vpop.f32.mrf.mxu1 }
 0x12c   :  { %549 = vmatmul.msk.f32.vlgmr.msrb.gmra.mxu0 %vm112_vm0, %v283_v37 }
 0x12d   :  { %v342_v39 = vpop.f32.mrf.mxu3 }
 0x12e   :  { %v343_v41 = vadd.f32 %v574_v38, %v342_v39 }
 0x130   :  { %v375_v42 = vadd.f32 %v372_v40, %v343_v41  ;;  %v403_v43 = vpop.f32.mrf.mxu2 }
 0x132   :  { %v406_v44 = vadd.f32 %v403_v43, %v375_v42 }
 0x134   :  { %v436_v45 = vmul.f32 %v571_v16, %v406_v44  ;;  %v463_v46 = vmul.f32 %v572_v17, %v406_v44  ;;  %554 = vmatmul.msk.f32.vlgmr.msra.gmra.mxu0 %vm112_vm0, %v406_v44 }
 0x136   :  { %457 = vmatpush.msra.mxu3 %v436_v45  ;;  %484 = vmatpush.msrb.mxu1 %v463_v46 }
 0x137   :  { %555 = vmatmul.msk.f32.vlgmr.msra.gmra.mxu3 %vm142_vm1, %v438_v47  ;;  %556 = vmatmul.msk.f32.vlgmr.msrb.gmra.mxu1 %vm142_vm1, %v465_v48 }
 0x1a9   :  { %v310_v50 = vpop.f32.mrf.mxu0 }
 0x1aa   :  { %v311_v51 = vadd.f32 %v575_v49, %v310_v50 }
 0x1ac   :  { %313 = vst [vmem:[#allocation11] sm:$0xff] %v311_v51 }
 0x1b1   :  { %v433_v53 = vpop.f32.mrf.mxu0 }
 0x1b2   :  { %v434_v54 = vadd.f32 %v576_v52, %v433_v53 }
 0x1b4   :  { %v486_v56 = vpop.f32.mrf.mxu1 }
 0x1ba   :  { %v459_v55 = vpop.f32.mrf.mxu3 }
 0x1bb   :  { %v462_v57 = vadd.f32 %v459_v55, %v434_v54 }
 0x1bd   :  { %v489_v58 = vadd.f32 %v486_v56, %v462_v57 }
 0x1bf   :  { %557 = vmatmul.msk.f32.vlgmr.msrb.gmra.mxu2 %vm112_vm0, %v489_v58 }
 0x242   :  { %v516_v60 = vpop.f32.mrf.mxu2 }
 0x243   :  { %v517_v61 = vadd.f32 %v577_v59, %v516_v60 }
 0x245   :  { %520 = vst [vmem:[#allocation11 + $0x8] sm:$0xff] %v517_v61 }
 0x246   :  { %533 = dma.vmem_to_hbm [thread:$0]  %s526_s16, 256, %s528_s18, [#allocation4], %s731_s9, %s731_s9, %s732_s10  }
 0x247   :  { %728 = dma.done.wait [#allocation4], 256  }
 0x248   :  { %729 = vsyncadd [#allocation4], 4294967040 }
 0x249   :  { %538 = vsyncpa [#allocation3], 1 }
 0x24a   :  { %539 = vsyncpa [#allocation6], 1 }
 0x24b   :  { %540 = vsyncpa [#allocation9], 1 }
 0x24c   :  { %541 = vsyncpa [#allocation4], 1 }

</bundles_post_ra>
